<compile_context>
chip_gen: v7x
topology: tpu7x:2x2x1
jax: 0.10.0
libtpu: 0.0.40
codegen_flags: <defaults>
</compile_context>

<pallas_src>
import functools

import jax
import jax.numpy as jnp
from jax.experimental import pallas as pl
from jax.experimental.pallas import tpu as pltpu

LN_EPS = 1e-5


def _round_up(x, m):
    return (x + m - 1) // m * m


def _vmem_capacity_bytes():
    """Per-TensorCore VMEM capacity; conservative 64 MiB (v7x) if unknown."""
    try:
        info = pltpu.get_tpu_info()
        cap = getattr(info, "vmem_capacity_bytes", None)
        if cap:
            return int(cap)
    except Exception:
        pass
    return 64 << 20


def _vmem_estimate(row_tile, dim, hidden_tile, x_bytes, cd_bytes):
    """Rough VMEM bytes for one pipelined step (double-buffered I/O)."""
    return (
        2 * row_tile * dim * x_bytes                     # x tile (2-buffered)
        + 2 * row_tile * dim * x_bytes                   # out tile
        + 2 * dim * hidden_tile * cd_bytes               # W1 tile (2-buffered)
        + 2 * hidden_tile * dim * cd_bytes               # W2 tile (2-buffered)
        + 2 * (hidden_tile + 3 * dim) * 4                # biases, gamma, beta
        + row_tile * dim * (4 + cd_bytes)                # acc (f32) + xn cache
        + row_tile * hidden_tile * (4 + cd_bytes)        # h f32 + bf16 copy
    )


def ffn_kernel(x_ref, g_ref, b_ref, w1_ref, b1_ref, w2_ref, b2_ref, o_ref,
               acc_ref, xn_ref):
    """One (row_tile, hidden_tile) step of the feed-forward block.

    Grid = (row_tiles, hidden_tiles); hidden is the reduction axis (last).

    x_ref : (TR, dim)        input rows (resident across k)
    g_ref : (1, dim) f32     layernorm gamma
    b_ref : (1, dim) f32     layernorm beta
    w1_ref: (dim, TH)        linear1 weight tile (in x out), compute dtype
    b1_ref: (1, TH)  f32     linear1 bias tile
    w2_ref: (TH, dim)        linear2 weight tile (in x out), compute dtype
    b2_ref: (1, dim) f32     linear2 bias
    o_ref : (TR, dim)        output rows (written on last k)
    acc_ref: (TR, dim) f32   VMEM accumulator for linear2 output
    xn_ref : (TR, dim)       VMEM cache of LayerNorm(x) in compute dtype
    """
    k = pl.program_id(1)

    # --- Init: LayerNorm once per row tile, zero the accumulator ---
    @pl.when(k == 0)
    def _():
        x = x_ref[...].astype(jnp.float32)
        mean = jnp.mean(x, axis=-1, keepdims=True)
        cen = x - mean
        var = jnp.mean(cen * cen, axis=-1, keepdims=True)
        xn = cen * jax.lax.rsqrt(var + LN_EPS)
        xn = xn * g_ref[...] + b_ref[...]
        xn_ref[...] = xn.astype(xn_ref.dtype)
        acc_ref[...] = jnp.zeros_like(acc_ref)

    # --- Linear1 (this hidden tile) + SiLU, then partial Linear2 ---
    h = jnp.dot(xn_ref[...], w1_ref[...],
                preferred_element_type=jnp.float32) + b1_ref[...]
    h = h * jax.nn.sigmoid(h)  # SiLU / swish (exp runs on the EUP)
    acc_ref[...] += jnp.dot(h.astype(w2_ref.dtype), w2_ref[...],
                            preferred_element_type=jnp.float32)

    # --- Finalize: bias2 + residual (Dropout = identity in eval mode) ---
    @pl.when(k == pl.num_programs(1) - 1)
    def _():
        y = acc_ref[...] + b2_ref[...]
        o_ref[...] = (x_ref[...].astype(jnp.float32) + y).astype(o_ref.dtype)


@functools.partial(
    jax.jit,
    static_argnames=("row_tile", "hidden_tile", "compute_dtype",
                     "prefer_resident_weights"))
def feed_forward_pallas(x, gamma, beta, w1, b1, w2, b2, *,
                        row_tile=512, hidden_tile=1024,
                        compute_dtype=jnp.bfloat16,
                        prefer_resident_weights=True):
    """x: (batch, seq, dim). Weights in (in, out) convention."""
    batch, seq, dim = x.shape
    hidden = w1.shape[1]
    n_rows = batch * seq

    cd = compute_dtype
    x_bytes = jnp.dtype(x.dtype).itemsize
    cd_bytes = jnp.dtype(cd).itemsize

    vmem_cap = _vmem_capacity_bytes()
    budget = int(0.70 * vmem_cap)

    # --- Row tile: large, but guarantee >=2 blocks so v7x can use both TCs ---
    row_tile = min(row_tile, _round_up(n_rows, 8))
    if n_rows > 8:
        row_tile = min(row_tile, _round_up((n_rows + 1) // 2, 8))
    row_tile = max(8, row_tile)
    # Safety: shrink row tile until a minimal hidden tile fits the budget.
    min_ht = min(hidden, 128)
    while (row_tile > 8 and
           _vmem_estimate(row_tile, dim, min_ht, x_bytes, cd_bytes) > budget):
        row_tile = max(8, _round_up(row_tile // 2, 8))

    # --- Hidden tile: prefer resident weights (n_k = 1) when they fit ---
    if (prefer_resident_weights and
            _vmem_estimate(row_tile, dim, hidden, x_bytes, cd_bytes) <= budget):
        ht = hidden                      # weights DMA'd from HBM exactly once
        padded_hidden = hidden
    elif hidden <= 128:
        ht = hidden
        padded_hidden = hidden
    else:
        ht = min(hidden_tile, hidden)
        ht = max(128, (ht // 128) * 128)     # keep MXU-aligned tiles
        while (ht > 128 and
               _vmem_estimate(row_tile, dim, ht, x_bytes, cd_bytes) > budget):
            ht = max(128, ((ht // 2) // 128) * 128)
        # Zero-pad hidden instead of disabling K tiling (exact: SiLU(0)=0).
        padded_hidden = _round_up(hidden, ht)

    n_k = padded_hidden // ht
    padded_rows = _round_up(n_rows, row_tile)
    n_row_tiles = padded_rows // row_tile

    # --- Layout prep: flatten + pad rows, pad hidden, cast weights ---
    x2d = x.reshape(n_rows, dim)
    if padded_rows != n_rows:
        x2d = jnp.pad(x2d, ((0, padded_rows - n_rows), (0, 0)))

    w1c = w1.astype(cd)
    w2c = w2.astype(cd)
    b1_2d = b1.reshape(1, hidden).astype(jnp.float32)
    if padded_hidden != hidden:
        hp = padded_hidden - hidden
        w1c = jnp.pad(w1c, ((0, 0), (0, hp)))
        w2c = jnp.pad(w2c, ((0, hp), (0, 0)))
        b1_2d = jnp.pad(b1_2d, ((0, 0), (0, hp)))
    g2d = gamma.reshape(1, dim).astype(jnp.float32)
    be2d = beta.reshape(1, dim).astype(jnp.float32)
    b2_2d = b2.reshape(1, dim).astype(jnp.float32)

    # --- VMEM limit: headroom over the estimate, capped per generation ---
    vmem_est = _vmem_estimate(row_tile, dim, ht, x_bytes, cd_bytes)
    vmem_limit = int(min(int(0.90 * vmem_cap),
                         max(32 << 20, int(1.25 * vmem_est))))

    # --- Cost estimate: weights re-streamed per row tile unless resident ---
    weight_bytes = (w1c.size + w2c.size) * cd_bytes
    weight_traffic = weight_bytes if n_k == 1 else weight_bytes * n_row_tiles
    small_bytes = (b1_2d.size + b2_2d.size + g2d.size + be2d.size) * 4
    cost = pl.CostEstimate(
        flops=4 * n_rows * dim * hidden,                  # two matmuls
        transcendentals=n_rows * hidden,                  # sigmoid
        bytes_accessed=int(2 * n_rows * dim * x_bytes     # x read + out write
                           + weight_traffic + small_bytes),
    )

    grid = (n_row_tiles, n_k)

    out = pl.pallas_call(
        ffn_kernel,
        out_shape=jax.ShapeDtypeStruct((padded_rows, dim), x.dtype),
        grid_spec=pltpu.PrefetchScalarGridSpec(
            num_scalar_prefetch=0,
            grid=grid,
            in_specs=[
                pl.BlockSpec((row_tile, dim), lambda i, k: (i, 0)),    # x rows
                pl.BlockSpec((1, dim), lambda i, k: (0, 0)),           # gamma
                pl.BlockSpec((1, dim), lambda i, k: (0, 0)),           # beta
                pl.BlockSpec((dim, ht), lambda i, k: (0, k)),          # W1 tile
                pl.BlockSpec((1, ht), lambda i, k: (0, k)),            # b1 tile
                pl.BlockSpec((ht, dim), lambda i, k: (k, 0)),          # W2 tile
                pl.BlockSpec((1, dim), lambda i, k: (0, 0)),           # b2
            ],
            out_specs=pl.BlockSpec((row_tile, dim), lambda i, k: (i, 0)),
            scratch_shapes=[
                pltpu.VMEM((row_tile, dim), jnp.float32),  # acc
                pltpu.VMEM((row_tile, dim), cd),           # cached LayerNorm(x)
            ],
        ),
        compiler_params=pltpu.CompilerParams(
            dimension_semantics=("parallel", "arbitrary"),
            vmem_limit_bytes=vmem_limit,
        ),
        cost_estimate=cost,
    )(x2d, g2d, be2d, w1c, b1_2d, w2c, b2_2d)

    return out[:n_rows].reshape(batch, seq, dim)


def reference_ffn(x, gamma, beta, w1, b1, w2, b2):
    """Pure-JAX reference matching the PyTorch module (eval mode)."""
    xf = x.astype(jnp.float32)
    mean = jnp.mean(xf, axis=-1, keepdims=True)
    var = jnp.mean((xf - mean) ** 2, axis=-1, keepdims=True)
    xn = (xf - mean) / jnp.sqrt(var + LN_EPS) * gamma + beta
    h = xn @ w1 + b1
    h = h * jax.nn.sigmoid(h)
    y = h @ w2 + b2
    return (xf + y).astype(x.dtype)


if __name__ == "__main__":
    key = jax.random.PRNGKey(0)

    def build(key, batch, seq, dim, expansion):
        hidden = dim * expansion
        kx, kg, kb, kw1, kb1, kw2, kb2 = jax.random.split(key, 7)
        x = jax.random.normal(kx, (batch, seq, dim), dtype=jnp.float32)
        gamma = 1.0 + 0.1 * jax.random.normal(kg, (dim,), dtype=jnp.float32)
        beta = 0.1 * jax.random.normal(kb, (dim,), dtype=jnp.float32)
        # (in, out) convention, i.e. the transpose of nn.Linear.weight.
        w1 = jax.random.normal(kw1, (dim, hidden), dtype=jnp.float32) / jnp.sqrt(dim)
        b1 = 0.01 * jax.random.normal(kb1, (hidden,), dtype=jnp.float32)
        w2 = jax.random.normal(kw2, (hidden, dim), dtype=jnp.float32) / jnp.sqrt(hidden)
        b2 = 0.01 * jax.random.normal(kb2, (dim,), dtype=jnp.float32)
        return x, gamma, beta, w1, b1, w2, b2

    k1, k2, k3 = jax.random.split(key, 3)

    # Case 1: module's toy config (batch=2, seq=8, dim=32, expansion=4).
    # Exercises the resident-weight (n_k = 1) fast path.
    args1 = build(k1, 2, 8, 32, 4)
    ref1 = reference_ffn(*args1)

    out_f32 = jax.block_until_ready(
        feed_forward_pallas(*args1, compute_dtype=jnp.float32))
    assert out_f32.shape == args1[0].shape
    err = float(jnp.max(jnp.abs(out_f32 - ref1)))
    assert err < 1e-4, f"f32 path max abs err {err}"

    out_bf16 = jax.block_until_ready(
        feed_forward_pallas(*args1, compute_dtype=jnp.bfloat16))
    err_bf = float(jnp.max(jnp.abs(out_bf16 - ref1)))
    assert err_bf < 5e-2, f"bf16 path max abs err {err_bf}"

    # Case 2: exercises row padding (batch*seq=21) and the tiled hidden axis
    # with the f32 accumulator (hidden=256 split into two 128-wide tiles).
    args2 = build(k2, 3, 7, 64, 4)
    ref2 = reference_ffn(*args2)
    out2 = jax.block_until_ready(
        feed_forward_pallas(*args2, row_tile=512, hidden_tile=128,
                            compute_dtype=jnp.float32,
                            prefer_resident_weights=False))
    err2 = float(jnp.max(jnp.abs(out2 - ref2)))
    assert err2 < 1e-4, f"tiled-hidden path max abs err {err2}"

    # Case 3: exercises the hidden zero-padding path (hidden=192 padded to 256
    # so it tiles as two 128-wide K blocks); result must stay exact.
    args3 = build(k3, 2, 9, 64, 3)
    ref3 = reference_ffn(*args3)
    out3 = jax.block_until_ready(
        feed_forward_pallas(*args3, row_tile=512, hidden_tile=128,
                            compute_dtype=jnp.float32,
                            prefer_resident_weights=False))
    err3 = float(jnp.max(jnp.abs(out3 - ref3)))
    assert err3 < 1e-4, f"padded-hidden path max abs err {err3}"

    print("KERNEL_OK")
</pallas_src>

<mosaic_0001>
module attributes {stable_mosaic.version = 11 : i64} {
  func.func @ffn_kernel(%arg0: i32, %arg1: i32, %arg2: memref<8x32xf32, #tpu.memory_space<vmem>>, %arg3: memref<1x32xf32, #tpu.memory_space<vmem>>, %arg4: memref<1x32xf32, #tpu.memory_space<vmem>>, %arg5: memref<32x128xf32, #tpu.memory_space<vmem>>, %arg6: memref<1x128xf32, #tpu.memory_space<vmem>>, %arg7: memref<128x32xf32, #tpu.memory_space<vmem>>, %arg8: memref<1x32xf32, #tpu.memory_space<vmem>>, %arg9: memref<8x32xf32, #tpu.memory_space<vmem>>, %arg10: memref<8x32xf32, #tpu.memory_space<vmem>>, %arg11: memref<8x32xf32, #tpu.memory_space<vmem>>) attributes {dimension_semantics = [#tpu.dimension_semantics<parallel>, #tpu.dimension_semantics<arbitrary>], iteration_bounds = array<i64: 2, 1>, scalar_prefetch = 0 : i64, scratch_operands = 2 : i64, tpu.core_type = #tpu.core_type<tc>, window_params = [{transform_indices = @transform_0, window_bounds = array<i64: 8, 32>}, {pipeline_mode = #tpu.pipeline_mode<synchronous>, transform_indices = @transform_1, window_bounds = array<i64: 1, 32>}, {pipeline_mode = #tpu.pipeline_mode<synchronous>, transform_indices = @transform_2, window_bounds = array<i64: 1, 32>}, {transform_indices = @transform_3, window_bounds = array<i64: 32, 128>}, {transform_indices = @transform_4, window_bounds = array<i64: 1, 128>}, {transform_indices = @transform_5, window_bounds = array<i64: 128, 32>}, {pipeline_mode = #tpu.pipeline_mode<synchronous>, transform_indices = @transform_6, window_bounds = array<i64: 1, 32>}, {transform_indices = @transform_7, window_bounds = array<i64: 8, 32>}]} {
    %c0_i32 = arith.constant 0 : i32
    %0 = arith.cmpi eq, %arg1, %c0_i32 : i32
    %1 = arith.extui %0 : i1 to i32
    %c0_i32_0 = arith.constant 0 : i32
    %2 = arith.cmpi ne, %1, %c0_i32_0 : i32
    scf.if %2 {
      %c0_16 = arith.constant 0 : index
      %c0_17 = arith.constant 0 : index
      %23 = vector.load %arg2[%c0_16, %c0_17] : memref<8x32xf32, #tpu.memory_space<vmem>>, vector<8x32xf32>
      %cst_18 = arith.constant dense<0.000000e+00> : vector<8xf32>
      %24 = vector.multi_reduction <add>, %23, %cst_18 [1] : vector<8x32xf32> to vector<8xf32>
      %25 = vector.shape_cast %24 : vector<8xf32> to vector<8x1xf32>
      %cst_19 = arith.constant 3.200000e+01 : f32
      %26 = vector.broadcast %cst_19 : f32 to vector<8x1xf32>
      %27 = arith.divf %25, %26 : vector<8x1xf32>
      %28 = vector.broadcast %27 : vector<8x1xf32> to vector<8x32xf32>
      %29 = arith.subf %23, %28 : vector<8x32xf32>
      %30 = arith.mulf %29, %29 : vector<8x32xf32>
      %cst_20 = arith.constant dense<0.000000e+00> : vector<8xf32>
      %31 = vector.multi_reduction <add>, %30, %cst_20 [1] : vector<8x32xf32> to vector<8xf32>
      %32 = vector.shape_cast %31 : vector<8xf32> to vector<8x1xf32>
      %cst_21 = arith.constant 3.200000e+01 : f32
      %33 = vector.broadcast %cst_21 : f32 to vector<8x1xf32>
      %34 = arith.divf %32, %33 : vector<8x1xf32>
      %cst_22 = arith.constant 9.99999974E-6 : f32
      %35 = vector.broadcast %cst_22 : f32 to vector<8x1xf32>
      %36 = arith.addf %34, %35 : vector<8x1xf32>
      %37 = math.rsqrt %36 : vector<8x1xf32>
      %38 = vector.broadcast %37 : vector<8x1xf32> to vector<8x32xf32>
      %39 = arith.mulf %29, %38 : vector<8x32xf32>
      %c0_23 = arith.constant 0 : index
      %c0_24 = arith.constant 0 : index
      %40 = vector.load %arg3[%c0_23, %c0_24] : memref<1x32xf32, #tpu.memory_space<vmem>>, vector<1x32xf32>
      %41 = vector.broadcast %40 : vector<1x32xf32> to vector<8x32xf32>
      %42 = arith.mulf %39, %41 : vector<8x32xf32>
      %c0_25 = arith.constant 0 : index
      %c0_26 = arith.constant 0 : index
      %43 = vector.load %arg4[%c0_25, %c0_26] : memref<1x32xf32, #tpu.memory_space<vmem>>, vector<1x32xf32>
      %44 = vector.broadcast %43 : vector<1x32xf32> to vector<8x32xf32>
      %45 = arith.addf %42, %44 : vector<8x32xf32>
      %c0_27 = arith.constant 0 : index
      %c0_28 = arith.constant 0 : index
      %46 = vector.load %arg11[%c0_27, %c0_28] : memref<8x32xf32, #tpu.memory_space<vmem>>, vector<8x32xf32>
      tpu.vector_store %arg11[%c0_27, %c0_28], %45 {strides = array<i32>} : memref<8x32xf32, #tpu.memory_space<vmem>>, vector<8x32xf32>,
      %cst_29 = arith.constant 0.000000e+00 : f32
      %47 = vector.broadcast %cst_29 : f32 to vector<8x32xf32>
      %c0_30 = arith.constant 0 : index
      %c0_31 = arith.constant 0 : index
      %48 = vector.load %arg10[%c0_30, %c0_31] : memref<8x32xf32, #tpu.memory_space<vmem>>, vector<8x32xf32>
      tpu.vector_store %arg10[%c0_30, %c0_31], %47 {strides = array<i32>} : memref<8x32xf32, #tpu.memory_space<vmem>>, vector<8x32xf32>,
    } else {
    }
    %c0 = arith.constant 0 : index
    %c0_1 = arith.constant 0 : index
    %3 = vector.load %arg11[%c0, %c0_1] : memref<8x32xf32, #tpu.memory_space<vmem>>, vector<8x32xf32>
    %c0_2 = arith.constant 0 : index
    %c0_3 = arith.constant 0 : index
    %4 = vector.load %arg5[%c0_2, %c0_3] : memref<32x128xf32, #tpu.memory_space<vmem>>, vector<32x128xf32>
    %cst = arith.constant dense<0.000000e+00> : vector<8x128xf32>
    %5 = tpu.matmul %3, %4, %cst {dimension_numbers = #tpu.dot_dimension_numbers<[1], [0], [0], [1], [0, 0, 1, 1], [], []>} : vector<8x32xf32>, vector<32x128xf32>, vector<8x128xf32> -> vector<8x128xf32>
    %c0_4 = arith.constant 0 : index
    %c0_5 = arith.constant 0 : index
    %6 = vector.load %arg6[%c0_4, %c0_5] : memref<1x128xf32, #tpu.memory_space<vmem>>, vector<1x128xf32>
    %7 = vector.broadcast %6 : vector<1x128xf32> to vector<8x128xf32>
    %8 = arith.addf %5, %7 : vector<8x128xf32>
    %9 = arith.negf %8 : vector<8x128xf32>
    %10 = math.exp %9 : vector<8x128xf32>
    %cst_6 = arith.constant 1.000000e+00 : f32
    %11 = vector.broadcast %cst_6 : f32 to vector<8x128xf32>
    %12 = arith.addf %11, %10 : vector<8x128xf32>
    %13 = arith.divf %11, %12 : vector<8x128xf32>
    %14 = arith.mulf %8, %13 : vector<8x128xf32>
    %c0_7 = arith.constant 0 : index
    %c0_8 = arith.constant 0 : index
    %15 = vector.load %arg10[%c0_7, %c0_8] : memref<8x32xf32, #tpu.memory_space<vmem>>, vector<8x32xf32>
    %c0_9 = arith.constant 0 : index
    %c0_10 = arith.constant 0 : index
    %16 = vector.load %arg7[%c0_9, %c0_10] : memref<128x32xf32, #tpu.memory_space<vmem>>, vector<128x32xf32>
    %cst_11 = arith.constant dense<0.000000e+00> : vector<8x32xf32>
    %17 = tpu.matmul %14, %16, %cst_11 {dimension_numbers = #tpu.dot_dimension_numbers<[1], [0], [0], [1], [0, 0, 1, 1], [], []>} : vector<8x128xf32>, vector<128x32xf32>, vector<8x32xf32> -> vector<8x32xf32>
    %18 = arith.addf %15, %17 : vector<8x32xf32>
    %c0_12 = arith.constant 0 : index
    %c0_13 = arith.constant 0 : index
    %19 = vector.load %arg10[%c0_12, %c0_13] : memref<8x32xf32, #tpu.memory_space<vmem>>, vector<8x32xf32>
    tpu.vector_store %arg10[%c0_12, %c0_13], %18 {strides = array<i32>} : memref<8x32xf32, #tpu.memory_space<vmem>>, vector<8x32xf32>,
    %c0_i32_14 = arith.constant 0 : i32
    %20 = arith.cmpi eq, %arg1, %c0_i32_14 : i32
    %21 = arith.extui %20 : i1 to i32
    %c0_i32_15 = arith.constant 0 : i32
    %22 = arith.cmpi ne, %21, %c0_i32_15 : i32
    scf.if %22 {
      %c0_16 = arith.constant 0 : index
      %c0_17 = arith.constant 0 : index
      %23 = vector.load %arg10[%c0_16, %c0_17] : memref<8x32xf32, #tpu.memory_space<vmem>>, vector<8x32xf32>
      %c0_18 = arith.constant 0 : index
      %c0_19 = arith.constant 0 : index
      %24 = vector.load %arg8[%c0_18, %c0_19] : memref<1x32xf32, #tpu.memory_space<vmem>>, vector<1x32xf32>
      %25 = vector.broadcast %24 : vector<1x32xf32> to vector<8x32xf32>
      %26 = arith.addf %23, %25 : vector<8x32xf32>
      %c0_20 = arith.constant 0 : index
      %c0_21 = arith.constant 0 : index
      %27 = vector.load %arg2[%c0_20, %c0_21] : memref<8x32xf32, #tpu.memory_space<vmem>>, vector<8x32xf32>
      %28 = arith.addf %27, %26 : vector<8x32xf32>
      %c0_22 = arith.constant 0 : index
      %c0_23 = arith.constant 0 : index
      %29 = vector.load %arg9[%c0_22, %c0_23] : memref<8x32xf32, #tpu.memory_space<vmem>>, vector<8x32xf32>
      tpu.vector_store %arg9[%c0_22, %c0_23], %28 {strides = array<i32>} : memref<8x32xf32, #tpu.memory_space<vmem>>, vector<8x32xf32>,
    } else {
    }
    return
  }
  func.func @transform_0(%arg0: i32, %arg1: i32) -> (i32, i32) {
    %c0_i32 = arith.constant 0 : i32
    %c0_i32_0 = arith.constant 0 : i32
    return %arg0, %c0_i32 : i32, i32
  }
  func.func @transform_1(%arg0: i32, %arg1: i32) -> (i32, i32) {
    %c0_i32 = arith.constant 0 : i32
    %c0_i32_0 = arith.constant 0 : i32
    %c0_i32_1 = arith.constant 0 : i32
    return %c0_i32, %c0_i32_0 : i32, i32
  }
  func.func @transform_2(%arg0: i32, %arg1: i32) -> (i32, i32) {
    %c0_i32 = arith.constant 0 : i32
    %c0_i32_0 = arith.constant 0 : i32
    %c0_i32_1 = arith.constant 0 : i32
    return %c0_i32, %c0_i32_0 : i32, i32
  }
  func.func @transform_3(%arg0: i32, %arg1: i32) -> (i32, i32) {
    %c0_i32 = arith.constant 0 : i32
    %c0_i32_0 = arith.constant 0 : i32
    return %c0_i32, %arg1 : i32, i32
  }
  func.func @transform_4(%arg0: i32, %arg1: i32) -> (i32, i32) {
    %c0_i32 = arith.constant 0 : i32
    %c0_i32_0 = arith.constant 0 : i32
    return %c0_i32, %arg1 : i32, i32
  }
  func.func @transform_5(%arg0: i32, %arg1: i32) -> (i32, i32) {
    %c0_i32 = arith.constant 0 : i32
    %c0_i32_0 = arith.constant 0 : i32
    return %arg1, %c0_i32 : i32, i32
  }
  func.func @transform_6(%arg0: i32, %arg1: i32) -> (i32, i32) {
    %c0_i32 = arith.constant 0 : i32
    %c0_i32_0 = arith.constant 0 : i32
    %c0_i32_1 = arith.constant 0 : i32
    return %c0_i32, %c0_i32_0 : i32, i32
  }
  func.func @transform_7(%arg0: i32, %arg1: i32) -> (i32, i32) {
    %c0_i32 = arith.constant 0 : i32
    %c0_i32_0 = arith.constant 0 : i32
    return %arg0, %c0_i32 : i32, i32
  }
}

</mosaic_0001>

<bundles_post_ra>
// kernel: feed_forward_pallas.1
= control target key start
LH: loop header
LB: loop body
LE: loop exit
PB: predicated region body
PF: predicated region fallthrough
CT: control target
= control target key end

     0   :  { %12 = vsyncpa [#allocation5], 0  ;;  %s1199_s0 = inlined_call_operand.vmem [shape: f32[16,32], index: 0, kind: input, shape index: {}]   ;;  %s1200_s1 = inlined_call_operand.vmem [shape: f32[1,32], index: 1, kind: input, shape index: {}]   ;;  %s1201_s2 = inlined_call_operand.vmem [shape: f32[1,32], index: 2, kind: input, shape index: {}]   ;;  %s1202_s3 = inlined_call_operand.vmem [shape: f32[32,128], index: 3, kind: input, shape index: {}]   ;;  %s1203_s4 = inlined_call_operand.vmem [shape: f32[1,128], index: 4, kind: input, shape index: {}]   ;;  %s1204_s5 = inlined_call_operand.vmem [shape: f32[128,32], index: 5, kind: input, shape index: {}]   ;;  %s1205_s6 = inlined_call_operand.vmem [shape: f32[1,32], index: 6, kind: input, shape index: {}]   ;;  %s1206_s7 = inlined_call_operand.hbm [shape: f32[16,32], index: 7, kind: output, shape index: {}]  }
   0x1   :  { %14 = vsyncpa [#allocation5 + $0x1], 0  ;;  %s1003_s24 = smov 0   ;;  %s1005_s25 = smov 0  }
   0x2   :  { %s1007_s26 = smov 0   ;;  %s1009_s27 = smov 0  }
   0x3   :  { %s1011_s28 = smov 0   ;;  %s1013_s29 = smov 0  }
   0x4 LB: > { %s697_s30 = sadd.s32 4294967295, %s957_s29   ;;  %s698_s8 = sadd.s32 4294967294, %s957_s29   ;;  %s957_s29 = sphi %s1013_s29, %s20_s29   ;;  %s953_s28 = sphi %s1011_s28, %s1213_s28   ;;  %s949_s27 = sphi %s1009_s27, %s1212_s27   ;;  %s945_s26 = sphi %s1007_s26, %s1211_s26   ;;  %s941_s25 = sphi %s1005_s25, %s1210_s25   ;;  %s937_s24 = sphi %s1003_s24, %s1209_s24  }
   0x5   : > { %s32_s9 = sadd.s32 1, %s953_s28  ;;  %s206_s10 = sadd.s32 1, %s945_s26 }
   0x6   : > { %p34_p0 = scmp.ge.s32.totalorder %s32_s9, 2  ;;  %p216_p1 = scmp.ne.s32.totalorder %s945_s26, %s941_s25 }
   0x7   : > { %p217_p2 = scmp.eq.s32.totalorder %s697_s30, 1  ;;  %p222_p3 = scmp.ne.s32.totalorder %s941_s25, %s937_s24 }
   0x8   : > { %s1215_s9 = smov (%p34_p0, %s32_s9), 0  ;;  %p223_p5 = scmp.eq.s32.totalorder %s698_s8, 1 }
   0x9   : > { %p1043_p4 = por %p217_p2, %p216_p1  ;;  %s203_s12 = ssub.s32 %s953_s28, %s1215_s9 }
   0xa   : > { %p704_p6 = scmp.ge.s32.totalorder %s957_s29, 1  ;;  %p204_p7 = scmp.eq.s32.totalorder %s203_s12, 0 }
   0xb   : > { %p1050_p8 = por %p223_p5, %p222_p3  ;;  %p279_p9 = scmp.lt.s32.totalorder %s957_s29, 3 }
   0xc   : > { %s1056_s14 = scalar_select %p204_p7, %s945_s26, %s206_s10  }
   0xd   : > { %p280_p10 = pnand %p704_p6, %p279_p9 }
   0xe   : > { %p322_p11 = scmp.lt.s32.totalorder (!%p280_p10), %s949_s27, 1  ;;  %vm344_vm0 = vcmask (!%p280_p10), 261120   ;;  %v378_v7 = vld [vmem:[%s1202_s3] sm:$0xff] (!%p280_p10)  ;;  %v379_v8 = vld [vmem:[%s1202_s3 + $0x8] sm:$0xff] (!%p280_p10)  ;;  %v959_v10 = vmov (!%p280_p10), 0.0|0.0   ;;  %v380_v11 = vld [vmem:[%s1202_s3 + $0x10] sm:$0xff] (!%p280_p10) }
   0xf   : > { %283 = sbr.rel (%p280_p10) target bundleno = 830 (0x33e), region = 48  ;;  %v786_v9 = vpack.c.bf16 (!%p280_p10), %v379_v8, %v378_v7  ;;  %785 = vmatprep.subr.bf16.mxu0 (!%p280_p10), %v959_v10  ;;  %v381_v12 = vld [vmem:[%s1202_s3 + $0x18] sm:$0xff] (!%p280_p10)  ;;  %791 = vmatprep.subr.bf16.mxu1 (!%p280_p10), %v959_v10  ;;  %v960_v14 = vmov (!%p280_p10), 0.0   ;;  %vm961_vm1 = vmmov (!%p280_p10), 0   ;;  %v707_v19 = vld [vmem:[%s1200_s1] ss:$0 sm:$0xff] (!%p280_p10) }
  0x10   : > { %v789_v13 = vpack.c.bf16 (!%p280_p10), %v381_v12, %v380_v11  ;;  %376 = vst.msk [vmem:[#allocation2] sm:$0xff] (!%p280_p10), %vm344_vm0, %v960_v14  ;;  %747 = vmatprep.mubr.msk.f32.mxu0 (!%p280_p10), %vm961_vm1, %v960_v14  ;;  %782 = vmatprep.mubr.msk.f32.mxu1 (!%p280_p10), %vm961_vm1, %v960_v14  ;;  %v708_v21 = vld [vmem:[%s1201_s2] ss:$0 sm:$0xff] (!%p280_p10)  ;;  %v472_v26 = vld [vmem:[%s1204_s5 + $0x8] sm:$0xff] (!%p280_p10)  ;;  %v473_v28 = vld [vmem:[%s1204_s5 + $0x10] sm:$0xff] (!%p280_p10)  ;;  %s319_s12 = sand.u32 (!%p280_p10), 1, %s941_s25  }
  0x11   : > { %787 = vmatpush3.bf16.msra.mxu0 (!%p280_p10), %v786_v9  ;;  %v471_v25 = vld [vmem:[%s1204_s5] sm:$0xff] (!%p280_p10)  ;;  %v474_v29 = vld [vmem:[%s1204_s5 + $0x18] sm:$0xff] (!%p280_p10)  ;;  %v476_v32 = vld [vmem:[%s1204_s5 + $0x28] sm:$0xff] (!%p280_p10)  ;;  %s714_s18 = sshll.u32 (!%p280_p10), %s949_s27, 7  ;;  %s575_s30 = scalar_lea.sflag (!%p280_p10), [#allocation5], %s319_s12 }
  0x12   : > { %788 = vmatprep.subr.bf16.mxu0 (!%p280_p10), %v959_v10  ;;  %v792_v27 = vpack.c.bf16 (!%p280_p10), %v472_v26, %v471_v25  ;;  %v795_v30 = vpack.c.bf16 (!%p280_p10), %v474_v29, %v473_v28  ;;  %v475_v31 = vld [vmem:[%s1204_s5 + $0x20] sm:$0xff] (!%p280_p10)  ;;  %v477_v34 = vld [vmem:[%s1204_s5 + $0x30] sm:$0xff] (!%p280_p10)  ;;  %v478_v35 = vld [vmem:[%s1204_s5 + $0x38] sm:$0xff] (!%p280_p10)  ;;  %s1151_s23 = scalar_lea.hbm (!%p280_p10), %s1206_s7, %s714_s18 }
  0x13   : > { %v798_v33 = vpack.c.bf16 (!%p280_p10), %v476_v32, %v475_v31  ;;  %v801_v36 = vpack.c.bf16 (!%p280_p10), %v478_v35, %v477_v34  ;;  %v479_v37 = vld [vmem:[%s1204_s5 + $0x40] sm:$0xff] (!%p280_p10)  ;;  %v480_v38 = vld [vmem:[%s1204_s5 + $0x48] sm:$0xff] (!%p280_p10)  ;;  %v481_v40 = vld [vmem:[%s1204_s5 + $0x50] sm:$0xff] (!%p280_p10) }
  0x14   : > { %793 = vmatpush3.bf16.msra.mxu1 (!%p280_p10), %v792_v27  ;;  %v804_v39 = vpack.c.bf16 (!%p280_p10), %v480_v38, %v479_v37  ;;  %v482_v41 = vld [vmem:[%s1204_s5 + $0x58] sm:$0xff] (!%p280_p10)  ;;  %v483_v43 = vld [vmem:[%s1204_s5 + $0x60] sm:$0xff] (!%p280_p10)  ;;  %v484_v44 = vld [vmem:[%s1204_s5 + $0x68] sm:$0xff] (!%p280_p10) }
  0x15   : > { %790 = vmatpush3.bf16.msra.mxu0 (!%p280_p10), %v789_v13  ;;  %794 = vmatprep.subr.bf16.mxu1 (!%p280_p10), %v959_v10  ;;  %v807_v42 = vpack.c.bf16 (!%p280_p10), %v482_v41, %v481_v40  ;;  %v810_v45 = vpack.c.bf16 (!%p280_p10), %v484_v44, %v483_v43  ;;  %v485_v46 = vld [vmem:[%s1204_s5 + $0x70] sm:$0xff] (!%p280_p10)  ;;  %v486_v47 = vld [vmem:[%s1204_s5 + $0x78] sm:$0xff] (!%p280_p10)  ;;  %v709_v49 = vld [vmem:[%s1203_s4] ss:$0 sm:$0xff] (!%p280_p10) }
  0x16   : > { %s323_s15 = scalar_select %p322_p11, %s949_s27, 1  ;;  %v813_v48 = vpack.c.bf16 %v486_v47, %v485_v46  ;;  %v712_v62 = vld [vmem:[%s1205_s6] ss:$0 sm:$0xff] }
  0x17   : > { %v470_v58 = vld [vmem:[#allocation2] sm:$0xff]  ;;  %s962_s27 = smov [#allocation4]  }
  0x18   : > { %s706_s16 = sshll.u32 %s323_s15, 3  ;;  %796 = vmatpush3.bf16.msra.mxu1 %v795_v30  ;;  %s705_s15 = sshll.u32 %s319_s12, 3 }
  0x19   : > { %s325_s19 = scalar_lea.vmem %s1199_s0, %s706_s16  ;;  %797 = vmatprep.subr.bf16.mxu1 %v959_v10  ;;  %s883_s10 = sshll.u32 %s962_s27, 4  ;;  %s884_s10 = int_to_ptr.vmem [resolvable:$false] %s883_s10 }
  0x1a   : > { %v1063_v0 = vld [vmem:[%s325_s19] sm:$0xff]  ;;  %s321_s19 = scalar_lea.vmem [#allocation4], %s705_s15  ;;  %s885_s15 = scalar_lea.vmem %s884_s10, 256 }
  0x1b   : > { %v345_v1 = vsel %vm344_vm0, %v1063_v0, 0.0  ;;  %s588_s20 = sshll.u32 %s321_s19, 4  ;;  %s1153_s20 = int_to_ptr.vmem [resolvable:$true] %s588_s20 }
  0x1c   : > { %346 = vadd.xlane.f32.xlu0 %v345_v1  ;;  %799 = vmatpush3.bf16.msra.mxu1 %v798_v33  ;;  %s879_s8 = scalar_lea.vmem %s1153_s20, 128  ;;  %p886_p1 = scmp.lt.s32.totalorder %s1153_s20, %s884_s10 }
  0x1d   : > { %800 = vmatprep.subr.bf16.mxu1 %v959_v10  ;;  %p880_p12 = scmp.ne.s32.totalorder %s1153_s20, %s879_s8  ;;  %p887_p2 = scmp.lt.s32.totalorder %s885_s15, %s879_s8 }
  0x1f   : > { %p881_p13 = pnand %p880_p12, %p1043_p4  ;;  %p888_p3 = por %p887_p2, %p886_p1 }
  0x20   : > { %802 = vmatpush3.bf16.msra.mxu1 %v801_v36 }
  0x21   : > { %803 = vmatprep.subr.bf16.mxu1 %v959_v10  ;;  %p882_p0 = pneg %p881_p13 }
  0x23   : > { %p889_p5 = pnand %p888_p3, %p882_p0 }
  0x24   : > { %805 = vmatpush3.bf16.msra.mxu1 %v804_v39 }
  0x25   : > { %806 = vmatprep.subr.bf16.mxu1 %v959_v10 }
  0x28   : > { %808 = vmatpush3.bf16.msra.mxu1 %v807_v42 }
  0x29   : > { %809 = vmatprep.subr.bf16.mxu1 %v959_v10 }
  0x2c   : > { %811 = vmatpush3.bf16.msra.mxu1 %v810_v45 }
  0x2d   : > { %812 = vmatprep.subr.bf16.mxu1 %v959_v10 }
  0x30   : > { %814 = vmatpush3.bf16.msra.mxu1 %v813_v48 }
  0xa9   : > { %v347_v2 = vpop.xlane.xlu0 %346 }
  0xaa   : > { %v349_v3 = vmul.f32 0.03125, %v347_v2 }
  0xac   : > { %v350_v4 = vsub.f32 %v1063_v0, %v349_v3 }
  0xae   : > { %v351_v5 = vmul.f32 %v350_v4, %v350_v4 }
  0xb0   : > { %v352_v6 = vsel %vm344_vm0, %v351_v5, 0.0 }
  0xb1   : > { %353 = vadd.xlane.f32.xlu0 %v352_v6 }
 0x13e   : > { %v354_v15 = vpop.xlane.xlu0 %353 }
 0x13f   : > { %v355_v16 = vmul.f32 0.03125, %v354_v15 }
 0x141   : > { %v356_v17 = vadd.f32 1e-05, %v355_v16 }
 0x143   : > { %873 = vrsqrt.f32 %v356_v17 }
 0x14d   : > { %v874_v18 = vpop.eup %873 }
 0x14e   : > { %v358_v20 = vmul.f32 %v874_v18, %v350_v4 }
 0x150   : > { %v366_v22 = vmul.f32 %v707_v19, %v358_v20 }
 0x152   : > { %v374_v23 = vadd.f32 %v708_v21, %v366_v22 }
 0x154   : > { %375 = vst.msk [vmem:[#allocation3] sm:$0xff] %vm344_vm0, %v374_v23 }
 0x15b   : > { %v377_v24 = vld [vmem:[#allocation3] sm:$0xff] }
 0x15c   : > { %748 = vmatmul.mubr.msk.f32.vlgmr.msra.gmra.mrb[0].mxu0 %vm344_vm0, %v377_v24 }
 0x22f   : > { %v459_v50 = vpop.f32.mrb[0].mxu0 }
 0x230   : > { %v460_v51 = vadd.f32 %v709_v49, %v459_v50  ;;  %v749_v52 = vpop.f32.mrb[1].mxu0 }
 0x232   : > { %v711_v53 = vmul.f32 -1.442695, %v460_v51 }
 0x234   : > { %875 = vpow2.f32 %v711_v53 }
 0x23e   : > { %v876_v54 = vpop.eup %875 }
 0x23f   : > { %v466_v55 = vadd.f32 1.0, %v876_v54 }
 0x241   : > { %877 = vrcp.f32 %v466_v55 }
 0x24b   : > { %v878_v56 = vpop.eup %877 }
 0x24c   : > { %v469_v57 = vmul.f32 %v878_v56, %v460_v51 }
 0x24e   : > { %783 = vmatmul.mubr.f32.vlgmr.msra.gmra.mrb[0].mxu1 %v469_v57 }
 0x321   : > { %v553_v59 = vpop.f32.mrb[0].mxu1 }
 0x322   : > { %v557_v60 = vadd.f32 %v553_v59, %v470_v58  ;;  %v784_v61 = vpop.f32.mrb[1].mxu1 }
 0x324   : > { %558 = vst.msk [vmem:[#allocation2] sm:$0xff] %vm344_vm0, %v557_v60 }
 0x32b   : > { %v562_v63 = vld [vmem:[#allocation2] sm:$0xff] }
 0x32c   : > { %v570_v1 = vadd.f32 %v712_v62, %v562_v63 }
 0x32e   : > { %v572_v2 = vadd.f32 %v570_v1, %v1063_v0 }
 0x330   : > { %573 = vst.msk [vmem:[%s321_s19] sm:$0xff] %vm344_vm0, %v572_v2 }
 0x331   : > { %892 = shalt.err (!%p889_p5)
}
 0x332   : > { %s893_s12 = scalar_lea.hbm %s1151_s23, 128  ;;  %s897_s18 = scalar_lea.hbm %s1206_s7, 256 }
 0x333   : > { %p894_p6 = scmp.ne.s32.totalorder %s1151_s23, %s893_s12  ;;  %p898_p10 = scmp.lt.u32.totalorder %s1151_s23, %s1206_s7 }
 0x334   : > { %p899_p11 = scmp.lt.u32.totalorder %s897_s18, %s893_s12  ;;  %p901_p13 = scmp.lt.u32.totalorder %s893_s12, %s1151_s23 }
 0x335   : > { %p895_p7 = pnand %p894_p6, %p1043_p4 }
 0x336   : > { %p900_p12 = por %p899_p11, %p898_p10 }
 0x337   : > { %p896_p9 = pneg %p895_p7 }
 0x338   : > { %p902_p0 = por %p901_p13, %p900_p12 }
 0x33a   : > { %p903_p1 = pnand %p902_p0, %p896_p9 }
 0x33c   : > { %906 = shalt.err (!%p903_p1)
}
 0x33d   : > { %815 = dma.vmem_to_hbm [thread:$0]  (%p1043_p4), %s1153_s20, 128, %s1151_s23, %s575_s30  }
 0x33e PF: > { %p821_p2 = scmp.ge.s32.totalorder %s957_s29, 2  ;;  %s600_s22 = sand.u32 1, %s937_s24  }
 0x33f   : > { %s601_s8 = scalar_lea.sflag [#allocation5], %s600_s22 }
 0x340   : > { %p818_p3 = pnand %p821_p2, %p1050_p8 }
 0x342   : > { %932 = dma.done.wait (!%p818_p3), %s601_s8, 128  }
 0x343   : > { %934 = vsyncadd (!%p818_p3), %s601_s8, 4294967168  ;;  %s20_s29 = sadd.s32 1, %s957_s29   ;;  %s1209_s24 = smov %s941_s25 }
 0x344   : > { %p17_p5 = scmp.ge.s32.totalorder %s20_s29, 4   ;;  %s1210_s25 = smov %s945_s26 }
 0x345   : > { %s1211_s26 = smov %s1056_s14  ;;  %s1212_s27 = smov %s953_s28 }
 0x346   : > { %s1213_s28 = smov %s1215_s9  ;;  %19 = sbr.rel (!%p17_p5) target bundleno = 4 (0x4), region = 100 }
 0x34d   :  { %606 = vsyncpa [#allocation5], 1 }
 0x34e   :  { %608 = vsyncpa [#allocation5 + $0x1], 1 }

</bundles_post_ra>
